<compile_context>
chip_gen: v5e
topology: v5e:2x2
jax: 0.10.0
libtpu: 0.0.40
codegen_flags: <defaults>
</compile_context>

<pallas_src>
import jax
import jax.numpy as jnp
from jax.experimental import pallas as pl
from jax.experimental.pallas import tpu as pltpu


def _make_hbm_copy_kernel(chunk_bounds):
    """Build a kernel that DMAs the input HBM ref straight into the output
    HBM ref (no VMEM round-trip), one outstanding DMA per chunk."""

    def kernel(x_ref, o_ref, sems):
        if chunk_bounds is None:
            # Single DMA of the whole array (also covers 0-d inputs).
            cp = pltpu.make_async_copy(x_ref, o_ref, sems.at[0])
            cp.start()
            cp.wait()
            return
        copies = []
        for c, (start, size) in enumerate(chunk_bounds):
            cp = pltpu.make_async_copy(
                x_ref.at[pl.ds(start, size)],
                o_ref.at[pl.ds(start, size)],
                sems.at[c],
            )
            cp.start()
            copies.append(cp)
        for cp in copies:
            cp.wait()

    return kernel


def _pallas_identity_copy(x: jax.Array) -> jax.Array:
    """Materialized copy of x via a direct HBM->HBM DMA Pallas kernel."""
    total = int(x.size)
    itemsize = jnp.dtype(x.dtype).itemsize
    nbytes = total * itemsize

    # Chunk along the leading axis into up to 4 outstanding DMAs, but only
    # when each chunk is >= ~1 MiB; small tensors use a single DMA.
    if x.ndim == 0:
        n_chunks = 1
        chunk_bounds = None
    else:
        dim0 = x.shape[0]
        n_chunks = int(max(1, min(4, dim0, nbytes // (1 << 20))))
        if n_chunks <= 1:
            n_chunks = 1
            chunk_bounds = None
        else:
            base, rem = divmod(dim0, n_chunks)
            chunk_bounds = []
            start = 0
            for c in range(n_chunks):
                size = base + (1 if c < rem else 0)
                chunk_bounds.append((start, size))
                start += size

    kernel = _make_hbm_copy_kernel(chunk_bounds)

    return pl.pallas_call(
        kernel,
        out_shape=jax.ShapeDtypeStruct(x.shape, x.dtype),
        in_specs=[pl.BlockSpec(memory_space=pl.ANY)],
        out_specs=pl.BlockSpec(memory_space=pl.ANY),
        scratch_shapes=[pltpu.SemaphoreType.DMA((n_chunks,))],
        compiler_params=pltpu.CompilerParams(has_side_effects=True),
        cost_estimate=pl.CostEstimate(
            flops=0, transcendentals=0, bytes_accessed=2 * nbytes
        ),
    )(x)


def weather_model_forward(x: jax.Array, *, materialize: bool = False) -> jax.Array:
    """Pallas implementation of WeatherModel.forward (identity).

    Fast path (default): return x — zero HBM traffic, exact.
    materialize=True: produce a fresh buffer via the HBM->HBM DMA kernel.
    """
    if not materialize or int(x.size) == 0:
        return x
    return _pallas_identity_copy(x)


if __name__ == "__main__":
    key = jax.random.PRNGKey(0)
    # NCHW input, small shape: batch=2, channels=4, spatial=16x16
    x = jax.random.normal(key, (2, 4, 16, 16), dtype=jnp.float32)

    # Zero-cost identity fast path (the optimal implementation).
    y_fast = weather_model_forward(x)
    assert y_fast is x

    # Exercise the Pallas HBM->HBM copy kernel once and validate it.
    y = weather_model_forward(x, materialize=True)
    y = jax.block_until_ready(y)

    assert y.shape == x.shape
    assert y.dtype == x.dtype
    assert bool(jnp.all(y == x))

    print("KERNEL_OK")
</pallas_src>

<mosaic_0001>
module attributes {stable_mosaic.version = 11 : i64} {
  func.func @kernel(%arg0: memref<2x4x16x16xf32, #tpu.memory_space<any>>, %arg1: memref<2x4x16x16xf32, #tpu.memory_space<any>>, %arg2: memref<1x!tpu.dma_semaphore, #tpu.memory_space<semaphore_mem>>) attributes {dimension_semantics = [], scalar_prefetch = 0 : i64, scratch_operands = 1 : i64, tpu.core_type = #tpu.core_type<tc>} {
    %c0_i32 = arith.constant 0 : i32
    %0 = tpu.memref_slice %arg2[%c0_i32] : memref<1x!tpu.dma_semaphore, #tpu.memory_space<semaphore_mem>> -> memref<1x!tpu.dma_semaphore, #tpu.memory_space<semaphore_mem>>
    %1 = tpu.memref_squeeze %0 : memref<1x!tpu.dma_semaphore, #tpu.memory_space<semaphore_mem>> -> memref<!tpu.dma_semaphore, #tpu.memory_space<semaphore_mem>>
    tpu.enqueue_dma source(%arg0 : memref<2x4x16x16xf32, #tpu.memory_space<any>>) target(%arg1 : memref<2x4x16x16xf32, #tpu.memory_space<any>>) target_semaphore(%1 : memref<!tpu.dma_semaphore, #tpu.memory_space<semaphore_mem>>)
    %c0_i32_0 = arith.constant 0 : i32
    %2 = tpu.memref_slice %arg2[%c0_i32_0] : memref<1x!tpu.dma_semaphore, #tpu.memory_space<semaphore_mem>> -> memref<1x!tpu.dma_semaphore, #tpu.memory_space<semaphore_mem>>
    %3 = tpu.memref_squeeze %2 : memref<1x!tpu.dma_semaphore, #tpu.memory_space<semaphore_mem>> -> memref<!tpu.dma_semaphore, #tpu.memory_space<semaphore_mem>>
    tpu.wait_dma2 semaphore(%3 : memref<!tpu.dma_semaphore, #tpu.memory_space<semaphore_mem>>) src(%arg0 : memref<2x4x16x16xf32, #tpu.memory_space<any>>) dst(%arg1 : memref<2x4x16x16xf32, #tpu.memory_space<any>>)
    return
  }
}

</mosaic_0001>

<bundles_post_ra>
// kernel: tpu_custom_call.1
= control target key start
LH: loop header
LB: loop body
LE: loop exit
PB: predicated region body
PF: predicated region fallthrough
CT: control target
= control target key end

     0   :  { %s34_s12 = smov [#allocation2]   ;;  %s35_s13 = smov [#allocation3]   ;;  %s53_s0 = inlined_call_operand.hbm [shape: f32[2,4,16,16], index: 0, kind: input, shape index: {}]   ;;  %s54_s1 = inlined_call_operand.hbm [shape: f32[2,4,16,16], index: 1, kind: output, shape index: {}]  }
   0x1   :  { %s10_s8 = sshll.u32 %s53_s0, 4  ;;  %s12_s11 = sshll.u32 %s54_s1, 4  ;;  %s11_s8 = int_to_ptr.hbm [resolvable:$true] %s10_s8  ;;  %s13_s11 = int_to_ptr.hbm [resolvable:$true] %s12_s11 }
   0x2   :  { %s36_s14 = smov 0  }
   0x3   :  { %16 = dma.general %s11_s8, 2048, %s13_s11, %s34_s12, %s35_s13, [#allocation4], %s36_s14, 0  }
   0x4   :  { %32 = dma.done.wait [#allocation2], 2048 }
   0x5   :  { %33 = vsyncadd [#allocation2], 4294965248 }
   0x6   :  { %22 = vsyncmov [#allocation2] }
   0x9   :  { %s23_s15 = vpop.sfrf %22 }
   0xa   :  { %p28_p0 = scmp.ne.s32.totalorder %s23_s15, 0 }
   0xc   :  { %27 = shalt.err (%p28_p0)  }

</bundles_post_ra>
